<compile_context>
chip_gen: v7x
topology: tpu7x:2x2x1
jax: 0.10.0
libtpu: 0.0.40
codegen_flags: <defaults>
</compile_context>

<pallas_src>
import math

import jax
import jax.numpy as jnp
from jax.experimental import pallas as pl
from jax.experimental.pallas import tpu as pltpu

HIDDEN_D = 8
N_HEADS = 2
D_HEAD = HIDDEN_D // N_HEADS
MLP_RATIO = 4
MLP_D = MLP_RATIO * HIDDEN_D
LN_EPS = 1e-5


def _layernorm(v, g, b):
    mu = jnp.mean(v, axis=-1, keepdims=True)
    var = jnp.mean(jnp.square(v - mu), axis=-1, keepdims=True)
    return (v - mu) * jax.lax.rsqrt(var + LN_EPS) * g + b


def vit_block_kernel(x_ref, wqkv_ref, w1_ref, w2_ref, vec_ref, o_ref):
    D, H, DH, DM = HIDDEN_D, N_HEADS, D_HEAD, MLP_D
    x = x_ref[...]                                    # (S, D) f32, one batch element

    vec = vec_ref[...]                                # (8, 32) f32 packed small params
    ln1g, ln1b = vec[0:1, :D], vec[1:2, :D]
    ln2g, ln2b = vec[2:3, :D], vec[3:4, :D]
    b2 = vec[4:5, :D]
    bqkv = vec[5:6, :3 * D]
    b1 = vec[6:7, :DM]

    # ---- norm1 + fused QKV projection (1/sqrt(d_head) already folded into wq/bq) ----
    xn = _layernorm(x, ln1g, ln1b)
    qkv = jnp.dot(xn.astype(jnp.bfloat16), wqkv_ref[...],
                  preferred_element_type=jnp.float32) + bqkv          # (S, 3D) f32
    q, k, v = qkv[:, :D], qkv[:, D:2 * D], qkv[:, 2 * D:3 * D]

    # ---- per-head attention: d_head-wide contractions, softmax stats in f32 ----
    # TODO(synk): for many heads (ViT-Base H=12) fold heads into a leading axis and use a
    # single batched dot_general instead of a static per-head unroll.
    head_outs = []
    for h in range(H):
        sl = slice(h * DH, (h + 1) * DH)
        qh = q[:, sl].astype(jnp.bfloat16)
        kh = k[:, sl].astype(jnp.bfloat16)
        vh = v[:, sl].astype(jnp.bfloat16)
        s = jax.lax.dot_general(qh, kh, (((1,), (1,)), ((), ())),
                                preferred_element_type=jnp.float32)   # (S, S) f32
        s = s - jnp.max(s, axis=-1, keepdims=True)
        p = jnp.exp(s)
        p = p * pl.reciprocal(jnp.sum(p, axis=-1, keepdims=True), approx=True)  # EUP divide
        head_outs.append(jnp.dot(p.astype(jnp.bfloat16), vh,
                                 preferred_element_type=jnp.float32))  # (S, DH)
    attn = jnp.concatenate(head_outs, axis=-1)                         # (S, D)

    out1 = x + attn

    # ---- norm2 + MLP (Linear -> tanh-GELU (EUP) -> Linear) ----
    xn2 = _layernorm(out1, ln2g, ln2b)
    h1 = jnp.dot(xn2.astype(jnp.bfloat16), w1_ref[...],
                 preferred_element_type=jnp.float32) + b1              # (S, DM) f32
    c = math.sqrt(2.0 / math.pi)
    h1 = 0.5 * h1 * (1.0 + jnp.tanh(c * (h1 + 0.044715 * h1 * h1 * h1)))
    h2 = jnp.dot(h1.astype(jnp.bfloat16), w2_ref[...],
                 preferred_element_type=jnp.float32) + b2              # (S, D) f32

    o_ref[...] = (out1 + h2).astype(o_ref.dtype)


def vit_block(x, p):
    B, S, D = x.shape
    scale = 1.0 / math.sqrt(D_HEAD)

    # fuse q/k/v weights & biases; fold the score scale into the q path; bf16 weights for the MXU
    wqkv = jnp.concatenate([p["wq"] * scale, p["wk"], p["wv"]], axis=1).astype(jnp.bfloat16)
    bqkv = jnp.concatenate([p["bq"] * scale, p["bk"], p["bv"]], axis=1)    # stays f32
    w1 = p["w1"].astype(jnp.bfloat16)
    w2 = p["w2"].astype(jnp.bfloat16)

    # pack every small vector parameter (f32) into one (8, W) array -> single small DMA
    W = max(D, 3 * D, MLP_D)

    def row(vec_):
        vec_ = vec_.reshape(1, -1)
        return jnp.pad(vec_, ((0, 0), (0, W - vec_.shape[1])))

    vecs = jnp.concatenate(
        [row(p["ln1_g"]), row(p["ln1_b"]), row(p["ln2_g"]), row(p["ln2_b"]),
         row(p["b2"]), row(bqkv), row(p["b1"]),
         jnp.zeros((1, W), jnp.float32)], axis=0)                      # (8, W)

    const = lambda b: (0, 0)   # weights: constant block index -> resident, no per-step re-DMA

    return pl.pallas_call(
        vit_block_kernel,
        out_shape=jax.ShapeDtypeStruct((B, S, D), x.dtype),
        grid=(B,),
        in_specs=[
            pl.BlockSpec((None, S, D), lambda b: (b, 0, 0)),           # per-batch token block
            pl.BlockSpec((D, 3 * D), const),                            # fused QKV weight (bf16)
            pl.BlockSpec((D, MLP_D), const),                            # MLP w1 (bf16)
            pl.BlockSpec((MLP_D, D), const),                            # MLP w2 (bf16)
            pl.BlockSpec((8, W), const),                                # packed small params (f32)
        ],
        out_specs=pl.BlockSpec((None, S, D), lambda b: (b, 0, 0)),
        compiler_params=pltpu.CompilerParams(
            dimension_semantics=("parallel",)),     # v7x megacore: 2 TCs split the batch
    )(x, wqkv, w1, w2, vecs)


def init_params(key):
    """Deterministic synthetic parameters matching ViTBlock(hidden_d=8, n_heads=2)."""
    ks = jax.random.split(key, 10)
    D, dh, Dm = HIDDEN_D, D_HEAD, MLP_D

    def lin(k, fan_in, shape):
        bound = 1.0 / math.sqrt(fan_in)
        return jax.random.uniform(k, shape, jnp.float32, -bound, bound)

    # per-head q/k/v Linear(dh, dh): torch stores W as (out, in); y = x @ W.T + b
    wq_h = lin(ks[0], dh, (N_HEADS, dh, dh)); bq_h = lin(ks[1], dh, (N_HEADS, dh))
    wk_h = lin(ks[2], dh, (N_HEADS, dh, dh)); bk_h = lin(ks[3], dh, (N_HEADS, dh))
    wv_h = lin(ks[4], dh, (N_HEADS, dh, dh)); bv_h = lin(ks[5], dh, (N_HEADS, dh))

    def block_diag_T(w_heads):  # fuse per-head W.T into a (D, D) block-diagonal matrix
        M = jnp.zeros((D, D), jnp.float32)
        for h in range(N_HEADS):
            M = M.at[h * dh:(h + 1) * dh, h * dh:(h + 1) * dh].set(w_heads[h].T)
        return M

    return dict(
        ln1_g=jnp.ones((1, D), jnp.float32), ln1_b=jnp.zeros((1, D), jnp.float32),
        wq=block_diag_T(wq_h), bq=bq_h.reshape(1, D),
        wk=block_diag_T(wk_h), bk=bk_h.reshape(1, D),
        wv=block_diag_T(wv_h), bv=bv_h.reshape(1, D),
        ln2_g=jnp.ones((1, D), jnp.float32), ln2_b=jnp.zeros((1, D), jnp.float32),
        w1=lin(ks[6], D, (D, Dm)).astype(jnp.float32),    # pre-transposed: y = x @ w1 + b1
        b1=lin(ks[7], D, (1, Dm)).astype(jnp.float32),
        w2=lin(ks[8], Dm, (Dm, D)).astype(jnp.float32),
        b2=lin(ks[9], Dm, (1, D)).astype(jnp.float32),
    )


def vit_block_reference(x, p):
    """Plain-JAX f32 reference of the same forward (exact erf GELU / exact softmax)."""
    def ln(v, g, b):
        mu = v.mean(-1, keepdims=True)
        var = ((v - mu) ** 2).mean(-1, keepdims=True)
        return (v - mu) / jnp.sqrt(var + LN_EPS) * g + b

    xn = ln(x, p["ln1_g"][0], p["ln1_b"][0])
    q = xn @ p["wq"] + p["bq"][0]
    k = xn @ p["wk"] + p["bk"][0]
    v = xn @ p["wv"] + p["bv"][0]
    outs = []
    for h in range(N_HEADS):
        sl = slice(h * D_HEAD, (h + 1) * D_HEAD)
        s = (q[..., sl] @ jnp.swapaxes(k[..., sl], -1, -2)) / math.sqrt(D_HEAD)
        a = jax.nn.softmax(s, axis=-1)
        outs.append(a @ v[..., sl])
    out1 = x + jnp.concatenate(outs, axis=-1)
    xn2 = ln(out1, p["ln2_g"][0], p["ln2_b"][0])
    h1 = xn2 @ p["w1"] + p["b1"][0]
    h1 = 0.5 * h1 * (1.0 + jax.lax.erf(h1 / math.sqrt(2.0)))
    return out1 + h1 @ p["w2"] + p["b2"][0]


if __name__ == "__main__":
    key = jax.random.PRNGKey(0)
    kx, kp = jax.random.split(key)
    B, S, D = 2, 8, HIDDEN_D
    x = jax.random.normal(kx, (B, S, D), jnp.float32)
    params = init_params(kp)

    out = jax.block_until_ready(vit_block(x, params))

    ref = vit_block_reference(x, params)
    assert out.shape == (B, S, D)
    # tolerance covers bf16 matmul inputs, tanh-GELU vs exact erf, and the EUP
    # approximate-reciprocal softmax denominator (all O(1e-2) at these scales)
    assert jnp.allclose(out, ref, atol=5e-2, rtol=5e-2), "mismatch vs reference"
    print("KERNEL_OK")
</pallas_src>

<mosaic_0001>
module attributes {stable_mosaic.version = 11 : i64} {
  func.func @vit_block_kernel(%arg0: i32, %arg1: memref<1x8x8xf32, #tpu.memory_space<vmem>>, %arg2: memref<8x24xbf16, #tpu.memory_space<vmem>>, %arg3: memref<8x32xbf16, #tpu.memory_space<vmem>>, %arg4: memref<32x8xbf16, #tpu.memory_space<vmem>>, %arg5: memref<8x32xf32, #tpu.memory_space<vmem>>, %arg6: memref<1x8x8xf32, #tpu.memory_space<vmem>>) attributes {dimension_semantics = [#tpu.dimension_semantics<parallel>], iteration_bounds = array<i64: 2>, scalar_prefetch = 0 : i64, scratch_operands = 0 : i64, tpu.core_type = #tpu.core_type<tc>, window_params = [{transform_indices = @transform_0, window_bounds = array<i64: 1, 8, 8>}, {pipeline_mode = #tpu.pipeline_mode<synchronous>, transform_indices = @transform_1, window_bounds = array<i64: 8, 24>}, {pipeline_mode = #tpu.pipeline_mode<synchronous>, transform_indices = @transform_2, window_bounds = array<i64: 8, 32>}, {pipeline_mode = #tpu.pipeline_mode<synchronous>, transform_indices = @transform_3, window_bounds = array<i64: 32, 8>}, {pipeline_mode = #tpu.pipeline_mode<synchronous>, transform_indices = @transform_4, window_bounds = array<i64: 8, 32>}, {transform_indices = @transform_5, window_bounds = array<i64: 1, 8, 8>}]} {
    %c0 = arith.constant 0 : index
    %c0_0 = arith.constant 0 : index
    %c0_1 = arith.constant 0 : index
    %0 = vector.load %arg1[%c0, %c0_0, %c0_1] : memref<1x8x8xf32, #tpu.memory_space<vmem>>, vector<1x8x8xf32>
    %1 = vector.shape_cast %0 : vector<1x8x8xf32> to vector<8x8xf32>
    %c0_2 = arith.constant 0 : index
    %c0_3 = arith.constant 0 : index
    %2 = vector.load %arg5[%c0_2, %c0_3] : memref<8x32xf32, #tpu.memory_space<vmem>>, vector<8x32xf32>
    %3 = vector.extract_strided_slice %2 {offsets = [0, 0], sizes = [1, 8], strides = [1, 1]} : vector<8x32xf32> to vector<1x8xf32>
    %4 = vector.extract_strided_slice %2 {offsets = [1, 0], sizes = [1, 8], strides = [1, 1]} : vector<8x32xf32> to vector<1x8xf32>
    %5 = vector.extract_strided_slice %2 {offsets = [2, 0], sizes = [1, 8], strides = [1, 1]} : vector<8x32xf32> to vector<1x8xf32>
    %6 = vector.extract_strided_slice %2 {offsets = [3, 0], sizes = [1, 8], strides = [1, 1]} : vector<8x32xf32> to vector<1x8xf32>
    %7 = vector.extract_strided_slice %2 {offsets = [4, 0], sizes = [1, 8], strides = [1, 1]} : vector<8x32xf32> to vector<1x8xf32>
    %8 = vector.extract_strided_slice %2 {offsets = [5, 0], sizes = [1, 24], strides = [1, 1]} : vector<8x32xf32> to vector<1x24xf32>
    %9 = vector.extract_strided_slice %2 {offsets = [6, 0], sizes = [1, 32], strides = [1, 1]} : vector<8x32xf32> to vector<1x32xf32>
    %cst = arith.constant dense<0.000000e+00> : vector<8xf32>
    %10 = vector.multi_reduction <add>, %1, %cst [1] : vector<8x8xf32> to vector<8xf32>
    %11 = vector.shape_cast %10 : vector<8xf32> to vector<8x1xf32>
    %cst_4 = arith.constant 8.000000e+00 : f32
    %12 = vector.broadcast %cst_4 : f32 to vector<8x1xf32>
    %13 = arith.divf %11, %12 : vector<8x1xf32>
    %14 = vector.broadcast %13 : vector<8x1xf32> to vector<8x8xf32>
    %15 = arith.subf %1, %14 : vector<8x8xf32>
    %16 = arith.mulf %15, %15 : vector<8x8xf32>
    %cst_5 = arith.constant dense<0.000000e+00> : vector<8xf32>
    %17 = vector.multi_reduction <add>, %16, %cst_5 [1] : vector<8x8xf32> to vector<8xf32>
    %18 = vector.shape_cast %17 : vector<8xf32> to vector<8x1xf32>
    %cst_6 = arith.constant 8.000000e+00 : f32
    %19 = vector.broadcast %cst_6 : f32 to vector<8x1xf32>
    %20 = arith.divf %18, %19 : vector<8x1xf32>
    %21 = vector.broadcast %13 : vector<8x1xf32> to vector<8x8xf32>
    %22 = arith.subf %1, %21 : vector<8x8xf32>
    %cst_7 = arith.constant 9.99999974E-6 : f32
    %23 = vector.broadcast %cst_7 : f32 to vector<8x1xf32>
    %24 = arith.addf %20, %23 : vector<8x1xf32>
    %25 = math.rsqrt %24 : vector<8x1xf32>
    %26 = vector.broadcast %25 : vector<8x1xf32> to vector<8x8xf32>
    %27 = arith.mulf %22, %26 : vector<8x8xf32>
    %28 = vector.broadcast %3 : vector<1x8xf32> to vector<8x8xf32>
    %29 = arith.mulf %27, %28 : vector<8x8xf32>
    %30 = vector.broadcast %4 : vector<1x8xf32> to vector<8x8xf32>
    %31 = arith.addf %29, %30 : vector<8x8xf32>
    %32 = arith.truncf %31 : vector<8x8xf32> to vector<8x8xbf16>
    %c0_8 = arith.constant 0 : index
    %c0_9 = arith.constant 0 : index
    %33 = vector.load %arg2[%c0_8, %c0_9] : memref<8x24xbf16, #tpu.memory_space<vmem>>, vector<8x24xbf16>
    %cst_10 = arith.constant dense<0.000000e+00> : vector<8x24xf32>
    %34 = tpu.matmul %32, %33, %cst_10 {dimension_numbers = #tpu.dot_dimension_numbers<[1], [0], [0], [1], [0, 0, 1, 1], [], []>} : vector<8x8xbf16>, vector<8x24xbf16>, vector<8x24xf32> -> vector<8x24xf32>
    %35 = vector.broadcast %8 : vector<1x24xf32> to vector<8x24xf32>
    %36 = arith.addf %34, %35 : vector<8x24xf32>
    %37 = vector.extract_strided_slice %36 {offsets = [0, 0], sizes = [8, 8], strides = [1, 1]} : vector<8x24xf32> to vector<8x8xf32>
    %38 = vector.extract_strided_slice %36 {offsets = [0, 8], sizes = [8, 8], strides = [1, 1]} : vector<8x24xf32> to vector<8x8xf32>
    %39 = vector.extract_strided_slice %36 {offsets = [0, 16], sizes = [8, 8], strides = [1, 1]} : vector<8x24xf32> to vector<8x8xf32>
    %40 = vector.extract_strided_slice %37 {offsets = [0, 0], sizes = [8, 4], strides = [1, 1]} : vector<8x8xf32> to vector<8x4xf32>
    %41 = arith.truncf %40 : vector<8x4xf32> to vector<8x4xbf16>
    %42 = vector.extract_strided_slice %38 {offsets = [0, 0], sizes = [8, 4], strides = [1, 1]} : vector<8x8xf32> to vector<8x4xf32>
    %43 = arith.truncf %42 : vector<8x4xf32> to vector<8x4xbf16>
    %44 = vector.extract_strided_slice %39 {offsets = [0, 0], sizes = [8, 4], strides = [1, 1]} : vector<8x8xf32> to vector<8x4xf32>
    %45 = arith.truncf %44 : vector<8x4xf32> to vector<8x4xbf16>
    %cst_11 = arith.constant dense<0.000000e+00> : vector<8x8xf32>
    %46 = tpu.matmul %41, %43, %cst_11 {dimension_numbers = #tpu.dot_dimension_numbers<[1], [1], [0], [0], [0, 0, 1, 0], [], []>} : vector<8x4xbf16>, vector<8x4xbf16>, vector<8x8xf32> -> vector<8x8xf32>
    %cst_12 = arith.constant dense<0xFF800000> : vector<8xf32>
    %47 = vector.multi_reduction <maximumf>, %46, %cst_12 [1] : vector<8x8xf32> to vector<8xf32>
    %48 = vector.shape_cast %47 : vector<8xf32> to vector<8x1xf32>
    %49 = vector.broadcast %48 : vector<8x1xf32> to vector<8x8xf32>
    %50 = arith.subf %46, %49 : vector<8x8xf32>
    %51 = math.exp %50 : vector<8x8xf32>
    %cst_13 = arith.constant dense<0.000000e+00> : vector<8xf32>
    %52 = vector.multi_reduction <add>, %51, %cst_13 [1] : vector<8x8xf32> to vector<8xf32>
    %53 = vector.shape_cast %52 : vector<8xf32> to vector<8x1xf32>
    %54 = tpu.reciprocal %53 {approx = true} : vector<8x1xf32> -> vector<8x1xf32>
    %55 = vector.broadcast %54 : vector<8x1xf32> to vector<8x8xf32>
    %56 = arith.mulf %51, %55 : vector<8x8xf32>
    %57 = arith.truncf %56 : vector<8x8xf32> to vector<8x8xbf16>
    %cst_14 = arith.constant dense<0.000000e+00> : vector<8x4xf32>
    %58 = tpu.matmul %57, %45, %cst_14 {dimension_numbers = #tpu.dot_dimension_numbers<[1], [0], [0], [1], [0, 0, 1, 1], [], []>} : vector<8x8xbf16>, vector<8x4xbf16>, vector<8x4xf32> -> vector<8x4xf32>
    %59 = vector.extract_strided_slice %37 {offsets = [0, 4], sizes = [8, 4], strides = [1, 1]} : vector<8x8xf32> to vector<8x4xf32>
    %60 = arith.truncf %59 : vector<8x4xf32> to vector<8x4xbf16>
    %61 = vector.extract_strided_slice %38 {offsets = [0, 4], sizes = [8, 4], strides = [1, 1]} : vector<8x8xf32> to vector<8x4xf32>
    %62 = arith.truncf %61 : vector<8x4xf32> to vector<8x4xbf16>
    %63 = vector.extract_strided_slice %39 {offsets = [0, 4], sizes = [8, 4], strides = [1, 1]} : vector<8x8xf32> to vector<8x4xf32>
    %64 = arith.truncf %63 : vector<8x4xf32> to vector<8x4xbf16>
    %cst_15 = arith.constant dense<0.000000e+00> : vector<8x8xf32>
    %65 = tpu.matmul %60, %62, %cst_15 {dimension_numbers = #tpu.dot_dimension_numbers<[1], [1], [0], [0], [0, 0, 1, 0], [], []>} : vector<8x4xbf16>, vector<8x4xbf16>, vector<8x8xf32> -> vector<8x8xf32>
    %cst_16 = arith.constant dense<0xFF800000> : vector<8xf32>
    %66 = vector.multi_reduction <maximumf>, %65, %cst_16 [1] : vector<8x8xf32> to vector<8xf32>
    %67 = vector.shape_cast %66 : vector<8xf32> to vector<8x1xf32>
    %68 = vector.broadcast %67 : vector<8x1xf32> to vector<8x8xf32>
    %69 = arith.subf %65, %68 : vector<8x8xf32>
    %70 = math.exp %69 : vector<8x8xf32>
    %cst_17 = arith.constant dense<0.000000e+00> : vector<8xf32>
    %71 = vector.multi_reduction <add>, %70, %cst_17 [1] : vector<8x8xf32> to vector<8xf32>
    %72 = vector.shape_cast %71 : vector<8xf32> to vector<8x1xf32>
    %73 = tpu.reciprocal %72 {approx = true} : vector<8x1xf32> -> vector<8x1xf32>
    %74 = vector.broadcast %73 : vector<8x1xf32> to vector<8x8xf32>
    %75 = arith.mulf %70, %74 : vector<8x8xf32>
    %76 = arith.truncf %75 : vector<8x8xf32> to vector<8x8xbf16>
    %cst_18 = arith.constant dense<0.000000e+00> : vector<8x4xf32>
    %77 = tpu.matmul %76, %64, %cst_18 {dimension_numbers = #tpu.dot_dimension_numbers<[1], [0], [0], [1], [0, 0, 1, 1], [], []>} : vector<8x8xbf16>, vector<8x4xbf16>, vector<8x4xf32> -> vector<8x4xf32>
    %78 = tpu.concatenate %58, %77 in 1 : vector<8x4xf32>, vector<8x4xf32> -> vector<8x8xf32>
    %79 = arith.addf %1, %78 : vector<8x8xf32>
    %cst_19 = arith.constant dense<0.000000e+00> : vector<8xf32>
    %80 = vector.multi_reduction <add>, %79, %cst_19 [1] : vector<8x8xf32> to vector<8xf32>
    %81 = vector.shape_cast %80 : vector<8xf32> to vector<8x1xf32>
    %cst_20 = arith.constant 8.000000e+00 : f32
    %82 = vector.broadcast %cst_20 : f32 to vector<8x1xf32>
    %83 = arith.divf %81, %82 : vector<8x1xf32>
    %84 = vector.broadcast %83 : vector<8x1xf32> to vector<8x8xf32>
    %85 = arith.subf %79, %84 : vector<8x8xf32>
    %86 = arith.mulf %85, %85 : vector<8x8xf32>
    %cst_21 = arith.constant dense<0.000000e+00> : vector<8xf32>
    %87 = vector.multi_reduction <add>, %86, %cst_21 [1] : vector<8x8xf32> to vector<8xf32>
    %88 = vector.shape_cast %87 : vector<8xf32> to vector<8x1xf32>
    %cst_22 = arith.constant 8.000000e+00 : f32
    %89 = vector.broadcast %cst_22 : f32 to vector<8x1xf32>
    %90 = arith.divf %88, %89 : vector<8x1xf32>
    %91 = vector.broadcast %83 : vector<8x1xf32> to vector<8x8xf32>
    %92 = arith.subf %79, %91 : vector<8x8xf32>
    %cst_23 = arith.constant 9.99999974E-6 : f32
    %93 = vector.broadcast %cst_23 : f32 to vector<8x1xf32>
    %94 = arith.addf %90, %93 : vector<8x1xf32>
    %95 = math.rsqrt %94 : vector<8x1xf32>
    %96 = vector.broadcast %95 : vector<8x1xf32> to vector<8x8xf32>
    %97 = arith.mulf %92, %96 : vector<8x8xf32>
    %98 = vector.broadcast %5 : vector<1x8xf32> to vector<8x8xf32>
    %99 = arith.mulf %97, %98 : vector<8x8xf32>
    %100 = vector.broadcast %6 : vector<1x8xf32> to vector<8x8xf32>
    %101 = arith.addf %99, %100 : vector<8x8xf32>
    %102 = arith.truncf %101 : vector<8x8xf32> to vector<8x8xbf16>
    %c0_24 = arith.constant 0 : index
    %c0_25 = arith.constant 0 : index
    %103 = vector.load %arg3[%c0_24, %c0_25] : memref<8x32xbf16, #tpu.memory_space<vmem>>, vector<8x32xbf16>
    %cst_26 = arith.constant dense<0.000000e+00> : vector<8x32xf32>
    %104 = tpu.matmul %102, %103, %cst_26 {dimension_numbers = #tpu.dot_dimension_numbers<[1], [0], [0], [1], [0, 0, 1, 1], [], []>} : vector<8x8xbf16>, vector<8x32xbf16>, vector<8x32xf32> -> vector<8x32xf32>
    %105 = vector.broadcast %9 : vector<1x32xf32> to vector<8x32xf32>
    %106 = arith.addf %104, %105 : vector<8x32xf32>
    %cst_27 = arith.constant 5.000000e-01 : f32
    %107 = vector.broadcast %cst_27 : f32 to vector<8x32xf32>
    %108 = arith.mulf %107, %106 : vector<8x32xf32>
    %cst_28 = arith.constant 4.471500e-02 : f32
    %109 = vector.broadcast %cst_28 : f32 to vector<8x32xf32>
    %110 = arith.mulf %109, %106 : vector<8x32xf32>
    %111 = arith.mulf %110, %106 : vector<8x32xf32>
    %112 = arith.mulf %111, %106 : vector<8x32xf32>
    %113 = arith.addf %106, %112 : vector<8x32xf32>
    %cst_29 = arith.constant 0.797884583 : f32
    %114 = vector.broadcast %cst_29 : f32 to vector<8x32xf32>
    %115 = arith.mulf %114, %113 : vector<8x32xf32>
    %116 = math.tanh %115 : vector<8x32xf32>
    %cst_30 = arith.constant 1.000000e+00 : f32
    %117 = vector.broadcast %cst_30 : f32 to vector<8x32xf32>
    %118 = arith.addf %117, %116 : vector<8x32xf32>
    %119 = arith.mulf %108, %118 : vector<8x32xf32>
    %120 = arith.truncf %119 : vector<8x32xf32> to vector<8x32xbf16>
    %c0_31 = arith.constant 0 : index
    %c0_32 = arith.constant 0 : index
    %121 = vector.load %arg4[%c0_31, %c0_32] : memref<32x8xbf16, #tpu.memory_space<vmem>>, vector<32x8xbf16>
    %cst_33 = arith.constant dense<0.000000e+00> : vector<8x8xf32>
    %122 = tpu.matmul %120, %121, %cst_33 {dimension_numbers = #tpu.dot_dimension_numbers<[1], [0], [0], [1], [0, 0, 1, 1], [], []>} : vector<8x32xbf16>, vector<32x8xbf16>, vector<8x8xf32> -> vector<8x8xf32>
    %123 = vector.broadcast %7 : vector<1x8xf32> to vector<8x8xf32>
    %124 = arith.addf %122, %123 : vector<8x8xf32>
    %125 = arith.addf %79, %124 : vector<8x8xf32>
    %c0_34 = arith.constant 0 : index
    %c0_35 = arith.constant 0 : index
    %c0_36 = arith.constant 0 : index
    %126 = vector.load %arg6[%c0_34, %c0_35, %c0_36] : memref<1x8x8xf32, #tpu.memory_space<vmem>>, vector<1x8x8xf32>
    %127 = vector.shape_cast %126 : vector<1x8x8xf32> to vector<8x8xf32>
    %128 = vector.shape_cast %125 : vector<8x8xf32> to vector<1x8x8xf32>
    tpu.vector_store %arg6[%c0_34, %c0_35, %c0_36], %128 {strides = array<i32>} : memref<1x8x8xf32, #tpu.memory_space<vmem>>, vector<1x8x8xf32>,
    return
  }
  func.func @transform_0(%arg0: i32) -> (i32, i32, i32) {
    %c0_i32 = arith.constant 0 : i32
    %c0_i32_0 = arith.constant 0 : i32
    %c0_i32_1 = arith.constant 0 : i32
    return %arg0, %c0_i32, %c0_i32_0 : i32, i32, i32
  }
  func.func @transform_1(%arg0: i32) -> (i32, i32) {
    %c0_i32 = arith.constant 0 : i32
    %c0_i32_0 = arith.constant 0 : i32
    %c0_i32_1 = arith.constant 0 : i32
    return %c0_i32, %c0_i32_0 : i32, i32
  }
  func.func @transform_2(%arg0: i32) -> (i32, i32) {
    %c0_i32 = arith.constant 0 : i32
    %c0_i32_0 = arith.constant 0 : i32
    %c0_i32_1 = arith.constant 0 : i32
    return %c0_i32, %c0_i32_0 : i32, i32
  }
  func.func @transform_3(%arg0: i32) -> (i32, i32) {
    %c0_i32 = arith.constant 0 : i32
    %c0_i32_0 = arith.constant 0 : i32
    %c0_i32_1 = arith.constant 0 : i32
    return %c0_i32, %c0_i32_0 : i32, i32
  }
  func.func @transform_4(%arg0: i32) -> (i32, i32) {
    %c0_i32 = arith.constant 0 : i32
    %c0_i32_0 = arith.constant 0 : i32
    %c0_i32_1 = arith.constant 0 : i32
    return %c0_i32, %c0_i32_0 : i32, i32
  }
  func.func @transform_5(%arg0: i32) -> (i32, i32, i32) {
    %c0_i32 = arith.constant 0 : i32
    %c0_i32_0 = arith.constant 0 : i32
    %c0_i32_1 = arith.constant 0 : i32
    return %arg0, %c0_i32, %c0_i32_0 : i32, i32, i32
  }
}

</mosaic_0001>

<bundles_post_ra>
// kernel: tpu_custom_call.1
= control target key start
LH: loop header
LB: loop body
LE: loop exit
PB: predicated region body
PF: predicated region fallthrough
CT: control target
= control target key end

     0   :  { %10 = vsyncpa [#allocation3], 0  ;;  %s1383_s0 = inlined_call_operand.vmem [shape: f32[2,8,8], index: 0, kind: input, shape index: {}]   ;;  %s1384_s1 = inlined_call_operand.hbm [shape: bf16[8,24], index: 1, kind: input, shape index: {}]   ;;  %s1385_s2 = inlined_call_operand.hbm [shape: bf16[8,32], index: 2, kind: input, shape index: {}]   ;;  %s1386_s3 = inlined_call_operand.vmem [shape: bf16[32,8], index: 3, kind: input, shape index: {}]   ;;  %s1387_s4 = inlined_call_operand.vmem [shape: f32[8,32], index: 4, kind: input, shape index: {}]   ;;  %s1388_s5 = inlined_call_operand.hbm [shape: f32[2,8,8], index: 5, kind: output, shape index: {}]  }
   0x1   :  { %11 = vsyncpa [#allocation6], 0 }
   0x2   :  { %12 = vsyncpa [#allocation4], 0 }
   0x3   :  { %14 = vsyncpa [#allocation4 + $0x1], 0  ;;  %s1135_s18 = smov 0   ;;  %s1137_s19 = smov 0  }
   0x4   :  { %s1139_s20 = smov 0   ;;  %s1141_s21 = smov 0  }
   0x5 LB: > { %s1156_s22 = sadd.s32 4294967295, %s1092_s21   ;;  %s800_s23 = sadd.s32 4294967294, %s1092_s21   ;;  %s1092_s21 = sphi %s1141_s21, %s1406_s21   ;;  %s1088_s20 = sphi %s1139_s20, %s1405_s20   ;;  %s1084_s19 = sphi %s1137_s19, %s1404_s19   ;;  %s1080_s18 = sphi %s1135_s18, %s1403_s18  }
   0x6   : > { %s1160_s24 = sadd.s32 1, %s1092_s21   ;;  %s137_s25 = sadd.s32 1, %s1088_s20 }
   0x7   : > { %s134_s26 = ssub.s32 %s1092_s21, %s1160_s24  ;;  %p147_p0 = scmp.ne.s32.totalorder %s1088_s20, %s1084_s19 }
   0x8   : > { %p135_p1 = scmp.eq.s32.totalorder %s134_s26, 0  ;;  %p148_p2 = scmp.eq.s32.totalorder %s1156_s22, 1 }
   0x9   : > { %p153_p3 = scmp.ne.s32.totalorder %s1084_s19, %s1080_s18  ;;  %p154_p4 = scmp.eq.s32.totalorder %s800_s23, 1 }
   0xa   : > { %s1171_s27 = scalar_select %p135_p1, %s1088_s20, %s137_s25  }
   0xb   : > { %p1173_p5 = por %p148_p2, %p147_p0  ;;  %p1177_p6 = por %p154_p4, %p153_p3 }
   0xc   : > { %p801_p7 = scmp.ge.s32.totalorder %s1092_s21, 1  ;;  %p161_p8 = scmp.lt.s32.totalorder %s1092_s21, 3 }
   0xd   : > { %s1392_s28 = scalar_select %p1173_p5, 1, 0 }
   0xe   : > { %s1393_s29 = scalar_select %p1177_p6, 1, 0 }
   0xf   : > { %p1389_p9 = scmp.eq.s32.totalorder %s1156_s22, 0  ;;  %p1184_p10 = pnand %p801_p7, %p161_p8 }
  0x10   : > { %s1094_s6 = smov [#allocation2]   ;;  %s1095_s8 = smov [#allocation5]  }
  0x11   : > { %s1394_s30 = scalar_select %p1184_p10, 1, 0 }
  0x12   : > { %s174_s7 = sshll.u32 %s1094_s6, 4  ;;  %p892_p11 = pneg %p1184_p10  ;;  %s175_s7 = int_to_ptr.vmem [resolvable:$true] %s174_s7 }
  0x13   : > { %s185_s9 = sshll.u32 %s1095_s8, 4  ;;  %s966_s13 = scalar_lea.hbm %s1384_s1, 64  ;;  %s1196_s9 = int_to_ptr.vmem [resolvable:$true] %s185_s9 }
  0x14   : > { %p1192_p12 = pnand %p1389_p9, %p892_p11  ;;  %p967_p13 = scmp.ne.s32.totalorder %s1384_s1, %s966_s13 }
  0x15   : > { %p973_p3 = scmp.lt.u32.totalorder %s966_s13, %s1384_s1 }
  0x16   : > { %p968_p0 = pneg %p1192_p12 }
  0x18   : > { %p969_p1 = pnand %p968_p0, %p967_p13 }
  0x1a   : > { %p970_p2 = pneg %p969_p1 }
  0x1c   : > { %p975_p4 = pnand %p973_p3, %p970_p2 }
  0x1e   : > { %978 = shalt.err (!%p975_p4)
}
  0x1f   : > { %s979_s23 = scalar_lea.vmem %s175_s7, 64  ;;  %p987_p9 = scmp.lt.s32.totalorder %s175_s7, %s175_s7 }
  0x20   : > { %p980_p7 = scmp.ne.s32.totalorder %s175_s7, %s979_s23  ;;  %p988_p6 = scmp.lt.s32.totalorder %s979_s23, %s979_s23 }
  0x22   : > { %p982_p8 = pnand %p980_p7, %p968_p0  ;;  %p989_p5 = por %p988_p6, %p987_p9 }
  0x24   : > { %p983_p11 = pneg %p982_p8 }
  0x26   : > { %p990_p10 = pnand %p989_p5, %p983_p11 }
  0x28   : > { %993 = shalt.err (!%p990_p10)
}
  0x29   : > { %895 = dma.hbm_to_vmem [thread:$0]  (!%p1192_p12), %s1384_s1, 64, %s175_s7, [#allocation3]  }
  0x2a   : > { %s994_s11 = scalar_lea.hbm %s1385_s2, 64 }
  0x2b   : > { %p995_p13 = scmp.ne.s32.totalorder %s1385_s2, %s994_s11  ;;  %p1001_p9 = scmp.lt.u32.totalorder %s994_s11, %s1385_s2 }
  0x2d   : > { %p997_p6 = pnand %p995_p13, %p968_p0 }
  0x2f   : > { %p998_p5 = pneg %p997_p6 }
  0x31   : > { %p1003_p10 = pnand %p1001_p9, %p998_p5 }
  0x33   : > { %1006 = shalt.err (!%p1003_p10)
}
  0x34   : > { %s1007_s7 = scalar_lea.vmem %s1196_s9, 64  ;;  %p1015_p4 = scmp.lt.s32.totalorder %s1196_s9, %s1196_s9 }
  0x35   : > { %p1008_p1 = scmp.ne.s32.totalorder %s1196_s9, %s1007_s7  ;;  %p1016_p7 = scmp.lt.s32.totalorder %s1007_s7, %s1007_s7 }
  0x37   : > { %p1010_p2 = pnand %p1008_p1, %p968_p0  ;;  %p1017_p8 = por %p1016_p7, %p1015_p4 }
  0x39   : > { %p1011_p3 = pneg %p1010_p2 }
  0x3b   : > { %p1018_p11 = pnand %p1017_p8, %p1011_p3 }
  0x3d   : > { %1021 = shalt.err (!%p1018_p11)
}
  0x3e   : > { %898 = dma.hbm_to_vmem [thread:$0]  (!%p1192_p12), %s1385_s2, 64, %s1196_s9, [#allocation6]  }
  0x3f   : > { %p1396_p13 = scmp.ne.s32.totalorder %s1394_s30, 0 }
  0x40   : > { %p1397_p6 = scmp.eq.s32.totalorder (!%p1396_p13), %s1156_s22, 0 }
  0x41   : > { %211 = sbr.rel (%p1396_p13) target bundleno = 2391 (0x957), region = 40 }
  0x48   : > { %1067 = dma.done.wait (%p1397_p6), [#allocation3], 64   ;;  %p1398_p0 = pmov %p1397_p6 }
  0x4a   : > { %1069 = vsyncadd (%p1398_p0), [#allocation3], 4294967232  ;;  %p1399_p5 = pmov %p1398_p0 }
  0x4b   : > { %p1400_p9 = pmov %p1398_p0 }
  0x4c   : > { %1071 = dma.done.wait (%p1399_p5), [#allocation6], 64  }
  0x4d   : > { %1073 = vsyncadd (%p1400_p9), [#allocation6], 4294967232  ;;  %p242_p10 = scmp.lt.s32.totalorder %s1156_s22, 1  ;;  %vm249_vm0 = vcmask 64512   ;;  %v275_v7 = vld [vmem:[#allocation2] sm:$0xf]  ;;  %v264_v12 = vlaneseq }
  0x4e   : > { %vm283_vm1 = vcmask 1043456   ;;  %v1096_v8 = vmov 0.0   ;;  %vm1097_vm2 = vmmov 0   ;;  %v1280_v16 = vld [vmem:[%s1387_s4] sm:$0xff]  ;;  %s1098_s8 = smov 124   ;;  %s1099_s11 = smov 120  }
  0x4f   : > { %s243_s10 = scalar_select %p242_p10, %s1156_s22, 1  ;;  %838 = vmatprep.subr.bf16.mxu0 %v1096_v8  ;;  %v285_v9 = vsel %vm283_vm1, %v275_v7, 0  ;;  %840 = vmatprep.mubr.msk.bf16.mxu0 %vm1097_vm2, %v1096_v8  ;;  %v1274_v14 = vshrl.u32 %v264_v12, 7  ;;  %vm331_vm3 = vcmask 31744   ;;  %vm659_vm4 = vcmask 261120  }
  0x50   : > { %839 = vmatpush3.bf16.msra.mxu0 %v285_v9  ;;  %844 = vmatprep.subr.bf16.mxu1 %v1096_v8  ;;  %s1100_s12 = smov 116   ;;  %s1101_s13 = smov 108  }
  0x51   : > { %s809_s9 = sshll.u32 %s243_s10, 3  ;;  %846 = vmatprep.mubr.msk.bf16.mxu1 %vm1097_vm2, %v1096_v8  ;;  %850 = vmatprep.subr.bf16.mxu0 %v1096_v8  ;;  %v266_v15 = vsub.s32 0, %v1274_v14  ;;  %v271_v17 = vsub.s32 1, %v1274_v14  ;;  %v278_v25 = vsub.s32 5, %v1274_v14  ;;  %s1102_s14 = smov 112  }
  0x52   : > { %s245_s25 = scalar_lea.vmem %s1383_s0, %s809_s9  ;;  %s1103_s15 = smov 4  }
  0x53   : > { %v1260_v0 = vld [vmem:[%s245_s25] sm:$0xff]  ;;  %v267_v18 = vrot.slane %v1280_v16, %v266_v15  ;;  %v272_v21 = vrot.slane %v1280_v16, %v271_v17  ;;  %v279_v26 = vrot.slane %v1280_v16, %v278_v25  ;;  %s239_s9 = sand.u32 1, %s1084_s19   ;;  %s820_s30 = sshll.u32 %s1156_s22, 7 }
  0x54   : > { %v250_v1 = vsel %vm249_vm0, %v1260_v0, 0.0  ;;  %s808_s23 = sshll.u32 %s239_s9, 3  ;;  %s706_s22 = scalar_lea.sflag [#allocation4], %s239_s9 }
  0x55   : > { %251 = vadd.xlane.f32.xlu0 %v250_v1  ;;  %s241_s25 = scalar_lea.vmem [#allocation7], %s808_s23  ;;  %p1401_p1 = scmp.ne.s32.totalorder %s1392_s28, 0 }
  0x56   : > { %s719_s26 = sshll.u32 %s241_s25, 4  ;;  %s1342_s26 = int_to_ptr.vmem [resolvable:$true] %s719_s26 }
  0xe2   : > { %v252_v2 = vpop.xlane.xlu0 %251 }
  0xe3   : > { %v254_v3 = vmul.f32 0.125, %v252_v2 }
  0xe5   : > { %v255_v4 = vsub.f32 %v1260_v0, %v254_v3 }
  0xe7   : > { %v256_v5 = vmul.f32 %v255_v4, %v255_v4 }
  0xe9   : > { %v257_v6 = vsel %vm249_vm0, %v256_v5, 0.0 }
  0xea   : > { %258 = vadd.xlane.f32.xlu0 %v257_v6 }
 0x177   : > { %v259_v10 = vpop.xlane.xlu0 %258 }
 0x178   : > { %v260_v11 = vmul.f32 0.125, %v259_v10 }
 0x17a   : > { %v261_v13 = vadd.f32 1e-05, %v260_v11 }
 0x17c   : > { %952 = vrsqrt.f32 %v261_v13 }
 0x186   : > { %v953_v19 = vpop.eup %952 }
 0x187   : > { %v263_v20 = vmul.f32 %v953_v19, %v255_v4 }
 0x189   : > { %v268_v22 = vmul.f32 %v267_v18, %v263_v20 }
 0x18b   : > { %v273_v23 = vadd.f32 %v272_v21, %v268_v22 }
 0x18d   : > { %v274_v24 = vpack.c.bf16 %v273_v23, %v273_v23 }
 0x18f   : > { %841 = vmatmul.mubr.msk.bf16.vlgmr.msra.gmra.mrb[0].mxu0 %vm249_vm0, %v274_v24 }
 0x190   : > { %852 = vmatprep.mubr.msk.bf16.mxu0 %vm1097_vm2, %v1096_v8 }
 0x262   : > { %v321_v27 = vpop.f32.mrb[0].mxu0 }
 0x263   : > { %v322_v28 = vadd.f32 %v321_v27, %v279_v26  ;;  %v842_v29 = vpop.f32.mrb[1].mxu0  ;;  %v578_v27 = vld [vmem:[#allocation5] sm:$0xf] }
 0x264   : > { %v324_v30 = vpop.f32.mrb[2].mxu0 }
 0x265   : > { %v327_v31 = vpack.c.bf16 %v322_v28, %v322_v28  ;;  %v843_v32 = vpop.f32.mrb[3].mxu0  ;;  %v587_v28 = vsel %vm283_vm1, %v578_v27, 0 }
 0x266   : > { %v574_v32 = vsub.s32 3, %v1274_v14 }
 0x267   : > { %438 = vrot.lane.b32.xlu0 %v327_v31, %s1098_s8  ;;  %329 = vrot.lane.b32.xlu1 %v327_v31, %s1099_s11  ;;  %s1340_s11 = scalar_lea.hbm %s1388_s5, %s820_s30 }
 0x26b   : > { %440 = vrot.lane.b32.xlu1 %v327_v31, %s1100_s12  ;;  %s1022_s12 = scalar_lea.vmem %s1342_s26, 128 }
 0x26c   : > { %p1023_p12 = scmp.ne.s32.totalorder %s1342_s26, %s1022_s12 }
 0x26e   : > { %p1024_p2 = pnand %p1023_p12, %p1401_p1 }
 0x270   : > { %p1025_p3 = pneg %p1024_p2 }
 0x2d9   : > { %v330_v33 = vpop.permute.xlu1 %329  ;;  %v439_v37 = vpop.permute.xlu0 %438 }
 0x2da   : > { %v336_v34 = vsel %vm331_vm3, %v330_v33, 0 }
 0x2db   : > { %845 = vmatpush3.bf16.xpose.msra.mxu1 %v336_v34 }
 0x2dc   : > { %856 = vmatprep.subr.bf16.mxu1 %v1096_v8 }
 0x2dd   : > { %v441_v35 = vpop.permute.xlu1 %440 }
 0x2de   : > { %v446_v36 = vsel %vm331_vm3, %v441_v35, 0 }
 0x2e2   : > { %847 = vmatmul.mubr.msk.bf16.vlgmr.msra.gmra.mrb[0].mxu1 %vm331_vm3, %v327_v31 }
 0x2e3   : > { %857 = vmatpush3.bf16.xpose.msra.mxu1 %v446_v36  ;;  %858 = vmatprep.mubr.msk.bf16.mxu1 %vm1097_vm2, %v1096_v8  ;;  %v575_v36 = vrot.slane %v1280_v16, %v574_v32 }
 0x2e4   : > { %868 = vmatprep.subr.bf16.mxu1 %v1096_v8 }
 0x2ea   : > { %859 = vmatmul.mubr.msk.bf16.vlgmr.msra.gmra.mrb[4].mxu1 %vm331_vm3, %v439_v37 }
 0x2eb   : > { %870 = vmatprep.mubr.msk.bf16.mxu1 %vm1097_vm2, %v1096_v8  ;;  %869 = vmatpush3.bf16.msra.mxu1 %v587_v28 }
 0x3b5   : > { %v372_v38 = vpop.f32.mrb[0].mxu1 }
 0x3b6   : > { %v848_v39 = vpop.f32.mrb[1].mxu1  ;;  %v378_v40 = vsel %vm249_vm0, %v372_v38, -inf }
 0x3b7   : > { %379 = vmax.xlane.f32.xlu1 %v378_v40  ;;  %v375_v41 = vpop.f32.mrb[2].mxu1  ;;  %v950_v40 = vld [vmem:[%s1386_s3] sm:$0xff]  }
 0x3b8   : > { %v849_v42 = vpop.f32.mrb[3].mxu1  ;;  %v951_v41 = vld [vmem:[%s1386_s3 + $0x8] sm:$0xff]  }
 0x3b9   : > { %v581_v42 = vsub.s32 6, %v1274_v14 }
 0x3bd   : > { %v482_v43 = vpop.f32.mrb[4].mxu1 }
 0x3be   : > { %v860_v44 = vpop.f32.mrb[5].mxu1  ;;  %v488_v45 = vsel %vm249_vm0, %v482_v43, -inf }
 0x3bf   : > { %489 = vmax.xlane.f32.xlu0 %v488_v45  ;;  %v485_v46 = vpop.f32.mrb[6].mxu1 }
 0x3c0   : > { %v861_v47 = vpop.f32.mrb[7].mxu1 }
 0x3d5   : > { %500 = vrot.lane.b32.xlu0 %v327_v31, %s1101_s13  ;;  %s1104_s13 = smov [#allocation7]  }
 0x444   : > { %v380_v48 = vpop.xlane.xlu1 %379 }
 0x445   : > { %v381_v49 = vsub.f32 %v372_v38, %v380_v48 }
 0x447   : > { %v382_v50 = vmul.f32 1.442695, %v381_v49 }
 0x449   : > { %954 = vpow2.f32 %v382_v50 }
 0x44c   : > { %v490_v51 = vpop.xlane.xlu0 %489 }
 0x44d   : > { %v491_v52 = vsub.f32 %v482_v43, %v490_v51  ;;  %v582_v43 = vrot.slane %v1280_v16, %v581_v42 }
 0x44f   : > { %v492_v53 = vmul.f32 1.442695, %v491_v52 }
 0x450   : > { %v501_v1 = vpop.permute.xlu0 %500 }
 0x451   : > { %956 = vpow2.f32 %v492_v53  ;;  %v506_v3 = vsel %vm283_vm1, %v501_v1, 0 }
 0x453   : > { %v955_v54 = vpop.eup %954 }
 0x454   : > { %v384_v55 = vsel %vm249_vm0, %v955_v54, 0.0 }
 0x455   : > { %385 = vadd.xlane.f32.xlu1 %v384_v55 }
 0x45b   : > { %v957_v56 = vpop.eup %956 }
 0x45c   : > { %v494_v57 = vsel %vm249_vm0, %v957_v56, 0.0 }
 0x45d   : > { %495 = vadd.xlane.f32.xlu1 %v494_v57 }
 0x46e   : > { %390 = vrot.lane.b32.xlu1 %v327_v31, %s1102_s14  ;;  %s1026_s14 = sshll.u32 %s1104_s13, 4  ;;  %s1027_s14 = int_to_ptr.vmem [resolvable:$false] %s1026_s14 }
 0x46f   : > { %p1029_p4 = scmp.lt.s32.totalorder %s1342_s26, %s1027_s14 }
 0x4e2   : > { %v386_v58 = vpop.xlane.xlu1 %385 }
 0x4e3   : > { %958 = vrcp.f32 %v386_v58  ;;  %v645_v58 = vsub.s32 4, %v1274_v14 }
 0x4ea   : > { %v496_v59 = vpop.xlane.xlu1 %495 }
 0x4eb   : > { %960 = vrcp.f32 %v496_v59  ;;  %v646_v59 = vrot.slane %v1280_v16, %v645_v58 }
 0x4ed   : > { %v959_v60 = vpop.eup %958 }
 0x4ee   : > { %v388_v61 = vmul.f32 %v959_v60, %v955_v54  ;;  %v391_v62 = vpop.permute.xlu1 %390 }
 0x4ef   : > { %v396_v63 = vsel %vm283_vm1, %v391_v62, 0 }
 0x4f0   : > { %851 = vmatpush3.bf16.msra.mxu0 %v396_v63  ;;  %v389_v2 = vpack.c.bf16 %v388_v61, %v388_v61 }
 0x4f1   : > { %862 = vmatprep.subr.bf16.mxu0 %v1096_v8 }
 0x4f3   : > { %853 = vmatmul.mubr.msk.bf16.vlgmr.msra.gmra.mrb[4].mxu0 %vm249_vm0, %v389_v2 }
 0x4f4   : > { %863 = vmatpush3.bf16.msra.mxu0 %v506_v3  ;;  %864 = vmatprep.mubr.msk.bf16.mxu0 %vm1097_vm2, %v1096_v8 }
 0x4f5   : > { %v961_v4 = vpop.eup %960  ;;  %874 = vmatprep.subr.bf16.mxu0 %v1096_v8 }
 0x4f6   : > { %v498_v5 = vmul.f32 %v961_v4, %v957_v56 }
 0x4f8   : > { %v499_v6 = vpack.c.bf16 %v498_v5, %v498_v5 }
 0x4fb   : > { %865 = vmatmul.mubr.msk.bf16.vlgmr.msra.gmra.mrb[8].mxu0 %vm249_vm0, %v499_v6 }
 0x4fc   : > { %878 = vmatprep.mubr.msk.bf16.mxu0 %vm1097_vm2, %v1096_v8  ;;  %875 = vmatpush3.bf16.msra.mxu0 %v950_v40 }
 0x4fd   : > { %876 = vmatprep.subr.bf16.mxu0 %v1096_v8 }
 0x500   : > { %877 = vmatpush3.bf16.msra.mxu0 %v951_v41 }
 0x5c6   : > { %v432_v7 = vpop.f32.mrb[4].mxu0 }
 0x5c7   : > { %v854_v9 = vpop.f32.mrb[5].mxu0 }
 0x5c8   : > { %v435_v10 = vpop.f32.mrb[6].mxu0 }
 0x5c9   : > { %v855_v11 = vpop.f32.mrb[7].mxu0 }
 0x5ce   : > { %v542_v12 = vpop.f32.mrb[8].mxu0 }
 0x5cf   : > { %549 = vrot.lane.b32.xlu1 %v542_v12, %s1103_s15  ;;  %v866_v13 = vpop.f32.mrb[9].mxu0  ;;  %s1028_s15 = scalar_lea.vmem %s1027_s14, 256 }
 0x5d0   : > { %v545_v15 = vpop.f32.mrb[10].mxu0  ;;  %p1030_p7 = scmp.lt.s32.totalorder %s1028_s15, %s1022_s12 }
 0x5d1   : > { %v867_v17 = vpop.f32.mrb[11].mxu0 }
 0x5d2   : > { %p1031_p8 = por %p1030_p7, %p1029_p4 }
 0x5d4   : > { %p1032_p11 = pnand %p1031_p8, %p1025_p3 }
 0x641   : > { %v550_v18 = vpop.permute.xlu1 %549 }
 0x642   : > { %v552_v19 = vsel %vm331_vm3, %v432_v7, %v550_v18 }
 0x643   : > { %v553_v20 = vadd.f32 %v552_v19, %v1260_v0  ;;  %v569_v0 = vsub.s32 2, %v1274_v14 }
 0x645   : > { %v554_v21 = vsel %vm249_vm0, %v553_v20, 0.0  ;;  %v570_v33 = vrot.slane %v1280_v16, %v569_v0 }
 0x646   : > { %555 = vadd.xlane.f32.xlu1 %v554_v21 }
 0x6d3   : > { %v556_v22 = vpop.xlane.xlu1 %555 }
 0x6d4   : > { %v557_v23 = vmul.f32 0.125, %v556_v22 }
 0x6d6   : > { %v558_v24 = vsub.f32 %v553_v20, %v557_v23 }
 0x6d8   : > { %v559_v25 = vmul.f32 %v558_v24, %v558_v24 }
 0x6da   : > { %v560_v26 = vsel %vm249_vm0, %v559_v25, 0.0 }
 0x6db   : > { %561 = vadd.xlane.f32.xlu0 %v560_v26 }
 0x768   : > { %v562_v29 = vpop.xlane.xlu0 %561 }
 0x769   : > { %v563_v30 = vmul.f32 0.125, %v562_v29 }
 0x76b   : > { %v564_v31 = vadd.f32 1e-05, %v563_v30 }
 0x76d   : > { %962 = vrsqrt.f32 %v564_v31 }
 0x777   : > { %v963_v34 = vpop.eup %962 }
 0x778   : > { %v566_v35 = vmul.f32 %v963_v34, %v558_v24 }
 0x77a   : > { %v571_v37 = vmul.f32 %v570_v33, %v566_v35 }
 0x77c   : > { %v576_v38 = vadd.f32 %v575_v36, %v571_v37 }
 0x77e   : > { %v577_v39 = vpack.c.bf16 %v576_v38, %v576_v38 }
 0x780   : > { %871 = vmatmul.mubr.msk.bf16.vlgmr.msra.gmra.mrb[8].mxu1 %vm249_vm0, %v577_v39 }
 0x853   : > { %v623_v44 = vpop.f32.mrb[8].mxu1 }
 0x854   : > { %v624_v45 = vadd.f32 %v623_v44, %v582_v43  ;;  %v872_v46 = vpop.f32.mrb[9].mxu1 }
 0x855   : > { %v626_v47 = vpop.f32.mrb[10].mxu1 }
 0x856   : > { %v630_v48 = vmul.f32 0.044715, %v624_v45  ;;  %v873_v49 = vpop.f32.mrb[11].mxu1  ;;  %v629_v8 = vmul.f32 0.5, %v624_v45 }
 0x858   : > { %v631_v50 = vmul.f32 %v630_v48, %v624_v45 }
 0x85a   : > { %v632_v51 = vmul.f32 %v631_v50, %v624_v45 }
 0x85c   : > { %v633_v52 = vadd.f32 %v632_v51, %v624_v45 }
 0x85e   : > { %v634_v53 = vmul.f32 0.7978846, %v633_v52 }
 0x860   : > { %964 = vtanh.f32 %v634_v53 }
 0x86a   : > { %v965_v54 = vpop.eup %964 }
 0x86b   : > { %v636_v55 = vadd.f32 1.0, %v965_v54 }
 0x86d   : > { %v637_v56 = vmul.f32 %v636_v55, %v629_v8 }
 0x86f   : > { %v638_v57 = vpack.c.bf16 %v637_v56, %v637_v56 }
 0x871   : > { %879 = vmatmul.mubr.msk.bf16.vlgmr.msra.gmra.mrb[12].mxu0 %vm659_vm4, %v638_v57 }
 0x944   : > { %v697_v60 = vpop.f32.mrb[12].mxu0 }
 0x945   : > { %v698_v61 = vadd.f32 %v697_v60, %v646_v59  ;;  %v880_v62 = vpop.f32.mrb[13].mxu0 }
 0x946   : > { %v700_v63 = vpop.f32.mrb[14].mxu0 }
 0x947   : > { %v703_v1 = vadd.f32 %v698_v61, %v553_v20  ;;  %v881_v2 = vpop.f32.mrb[15].mxu0 }
 0x949   : > { %704 = vst.msk [vmem:[%s241_s25] sm:$0xff] %vm249_vm0, %v703_v1 }
 0x94a   : > { %1035 = shalt.err (!%p1032_p11)
}
 0x94b   : > { %s1036_s7 = scalar_lea.hbm %s1340_s11, 128  ;;  %s1040_s10 = scalar_lea.hbm %s1388_s5, 256 }
 0x94c   : > { %p1037_p13 = scmp.ne.s32.totalorder %s1340_s11, %s1036_s7  ;;  %p1041_p5 = scmp.lt.u32.totalorder %s1340_s11, %s1388_s5 }
 0x94d   : > { %p1042_p9 = scmp.lt.u32.totalorder %s1040_s10, %s1036_s7  ;;  %p1044_p12 = scmp.lt.u32.totalorder %s1036_s7, %s1340_s11 }
 0x94e   : > { %p1038_p6 = pnand %p1037_p13, %p1401_p1 }
 0x94f   : > { %p1043_p10 = por %p1042_p9, %p1041_p5 }
 0x950   : > { %p1039_p0 = pneg %p1038_p6 }
 0x951   : > { %p1045_p2 = por %p1044_p12, %p1043_p10 }
 0x953   : > { %p1046_p3 = pnand %p1045_p2, %p1039_p0 }
 0x955   : > { %1049 = shalt.err (!%p1046_p3)
}
 0x956   : > { %890 = dma.vmem_to_hbm [thread:$0]  (%p1401_p1), %s1342_s26, 128, %s1340_s11, %s706_s22  }
 0x957 PF: > { %p907_p4 = scmp.ge.s32.totalorder %s1092_s21, 2  ;;  %s731_s30 = sand.u32 1, %s1080_s18  }
 0x958   : > { %p1402_p7 = scmp.ne.s32.totalorder %s1393_s29, 0  ;;  %s732_s25 = scalar_lea.sflag [#allocation4], %s731_s30 }
 0x95a   : > { %p900_p8 = pnand %p907_p4, %p1402_p7 }
 0x95c   : > { %1075 = dma.done.wait (!%p900_p8), %s732_s25, 128  }
 0x95d   : > { %1077 = vsyncadd (!%p900_p8), %s732_s25, 4294967168  ;;  %p17_p11 = scmp.ge.s32.totalorder %s1160_s24, 4   ;;  %s1403_s18 = smov %s1084_s19 }
 0x95e   : > { %s1404_s19 = smov %s1088_s20  ;;  %s1405_s20 = smov %s1171_s27 }
 0x95f   : > { %s1406_s21 = smov %s1160_s24  ;;  %19 = sbr.rel (!%p17_p11) target bundleno = 5 (0x5), region = 84 }
 0x966   :  { %737 = vsyncpa [#allocation3], 1 }
 0x967   :  { %739 = vsyncpa [#allocation3 + $0x1], 1 }
 0x968   :  { %740 = vsyncpa [#allocation6], 1 }
 0x969   :  { %741 = vsyncpa [#allocation4], 1 }
 0x96a   :  { %743 = vsyncpa [#allocation4 + $0x1], 1 }

</bundles_post_ra>
